<compile_context>
chip_gen: v6e
topology: v6e:2x2x1
jax: 0.10.0
libtpu: 0.0.40
codegen_flags: <defaults>
</compile_context>

<pallas_src>
import functools

import jax
import jax.numpy as jnp
from jax.experimental import pallas as pl
from jax.experimental.pallas import tpu as pltpu


def _decoder_seq_kernel(x_ref, wih_ref, whh_ref, b_ref, wfc_ref, bfc_ref,
                        out_ref, xproj_ref, hs_ref, hsc_ref,
                        *, seq_len, hidden_size, unroll):
    T = seq_len
    H = hidden_size
    f32 = jnp.float32

    # ---- Serial recurrence: only on the first vocab tile.  Its results
    # (per-step hidden states) persist in VMEM scratch across the grid. ----
    @pl.when(pl.program_id(0) == 0)
    def _recurrence():
        # Hoisted input projection: one (T,E)@(E,4H) MXU matmul for all steps.
        xproj_ref[...] = (
            jnp.dot(x_ref[...], wih_ref[...], preferred_element_type=f32)
            + b_ref[...])

        w_hh = whh_ref[...]            # resident, loaded once

        def step(t, carry):
            h, c = carry                                       # (1,H) f32 each
            gates = (xproj_ref[pl.ds(t, 1), :]
                     + jnp.dot(h.astype(w_hh.dtype), w_hh,
                               preferred_element_type=f32))    # (1, 4H) f32
            # Gate layout [i, f, o, g]: one sigmoid over 3H lanes, one tanh
            # over H lanes, plus one tanh(c_new) -> 3 EUP pushes per step.
            sig = jax.nn.sigmoid(gates[:, :3 * H])
            g_g = jnp.tanh(gates[:, 3 * H:])
            i_g = sig[:, 0 * H:1 * H]
            f_g = sig[:, 1 * H:2 * H]
            o_g = sig[:, 2 * H:3 * H]
            c_new = f_g * c + i_g * g_g
            h_new = o_g * jnp.tanh(c_new)
            hs_ref[pl.ds(t, 1), :] = h_new     # stash h_t (plain f32 row store)
            return h_new, c_new

        h0 = jnp.zeros((1, H), f32)
        c0 = jnp.zeros((1, H), f32)
        # Bounded unroll: keeps LLO scheduling visibility without blowing up
        # vreg live ranges for long sequences.
        jax.lax.fori_loop(0, T, step, (h0, c0), unroll=unroll)

        # One full-tensor cast to the matmul operand dtype so every vocab
        # tile reuses it with no per-tile re-cast.
        hsc_ref[...] = hs_ref[...].astype(hsc_ref.dtype)

    # ---- Per-vocab-tile logits projection: (T,H)@(H,TN) + bias, one
    # lane-dense (1,T,TN) store.  The W_fc/b_fc tiles are BlockSpec
    # double-buffered, so the next tile's DMA overlaps this matmul. ----
    out = (jnp.dot(hsc_ref[...], wfc_ref[...], preferred_element_type=f32)
           + bfc_ref[...])
    out_ref[0] = out


def decoder_rnn_forward(captions, features, params, *, vocab_tile=512):
    """Pallas implementation of DecoderRNN.forward.

    captions: int32 (T,) token ids
    features: float32 (E,) image feature vector (PyTorch adds the batch dim)
    returns:  float32 (1, T, V) logits, like the PyTorch module
    """
    embed_tbl = params["embed"]          # (V, E)   weight dtype
    w_ih = params["w_ih"]                # (E, 4H)  weight dtype
    w_hh = params["w_hh"]                # (H, 4H)  weight dtype
    b = params["b"]                      # (1, 4H)  f32
    w_fc = params["w_fc"]                # (H, Vp)  weight dtype
    b_fc = params["b_fc"]                # (1, Vp)  f32

    T = captions.shape[0]
    E = embed_tbl.shape[1]
    V = embed_tbl.shape[0]               # un-padded vocab size
    H = w_hh.shape[0]
    Vp = w_fc.shape[1]                   # vocab padded to a multiple of 128
    cdt = w_ih.dtype                     # compute (matmul operand) dtype

    def nbytes(shape, dtype):
        n = 1
        for s in shape:
            n *= int(s)
        return n * jnp.dtype(dtype).itemsize

    # ---- Pick the vocab tile: multiple of 128 dividing Vp, shrunk until the
    # resident VMEM footprint fits comfortably under 64 MiB (v7x physical). ----
    tn = max(128, vocab_tile)
    while Vp % tn != 0:
        tn //= 2
    tn = max(tn, 128)

    def footprint(tn_):
        return (2 * nbytes((T, E), cdt)                 # x_seq   (double-buf)
                + 2 * nbytes((E, 4 * H), cdt)           # w_ih
                + 2 * nbytes((H, 4 * H), cdt)           # w_hh
                + 2 * nbytes((1, 4 * H), jnp.float32)   # b
                + 2 * nbytes((H, tn_), cdt)             # w_fc tile
                + 2 * nbytes((1, tn_), jnp.float32)     # b_fc tile
                + 2 * nbytes((1, T, tn_), jnp.float32)  # out tile
                + nbytes((T, 4 * H), jnp.float32)       # xproj scratch
                + nbytes((T, H), jnp.float32)           # hs scratch
                + nbytes((T, H), cdt))                  # hsc scratch

    cap = 64 * 1024 * 1024
    while tn > 128 and 2 * footprint(tn) > cap:
        tn //= 2
    vmem_limit = int(min(cap, max(2 * footprint(tn), 16 * 1024 * 1024)))

    # ---- Glue: embedding lookup + shifted input sequence.
    #   step 0 input = features, step t input = embed(captions[t-1])  (t >= 1)
    captions_embed = jnp.take(embed_tbl, captions, axis=0)            # (T, E)
    x_seq = jnp.concatenate(
        [features.astype(cdt)[None, :], captions_embed[:-1].astype(cdt)],
        axis=0)                                                        # (T, E)

    kernel = functools.partial(_decoder_seq_kernel, seq_len=T, hidden_size=H,
                               unroll=int(min(T, 8)))

    grid_spec = pltpu.PrefetchScalarGridSpec(
        num_scalar_prefetch=0,
        grid=(Vp // tn,),
        in_specs=[
            pl.BlockSpec((T, E), lambda j: (0, 0)),          # x_seq (resident)
            pl.BlockSpec((E, 4 * H), lambda j: (0, 0)),      # W_ih  (resident)
            pl.BlockSpec((H, 4 * H), lambda j: (0, 0)),      # W_hh  (resident)
            pl.BlockSpec((1, 4 * H), lambda j: (0, 0)),      # b     (resident)
            pl.BlockSpec((H, tn), lambda j: (0, j)),         # W_fc tile
            pl.BlockSpec((1, tn), lambda j: (0, j)),         # b_fc tile
        ],
        out_specs=pl.BlockSpec((1, T, tn), lambda j: (0, 0, j)),
        scratch_shapes=[
            pltpu.VMEM((T, 4 * H), jnp.float32),   # hoisted x @ W_ih + b
            pltpu.VMEM((T, H), jnp.float32),       # per-step hidden states (f32)
            pltpu.VMEM((T, H), cdt),               # hidden states in matmul dtype
        ],
    )

    out = pl.pallas_call(
        kernel,
        out_shape=jax.ShapeDtypeStruct((1, T, Vp), jnp.float32),
        grid_spec=grid_spec,
        compiler_params=pltpu.CompilerParams(
            # "arbitrary": grid iterations stay sequential on one TC so the
            # hidden-state scratch written at j==0 is visible to all tiles.
            dimension_semantics=("arbitrary",),
            vmem_limit_bytes=vmem_limit),
    )(x_seq, w_ih, w_hh, b, w_fc, b_fc)

    if Vp != V:
        out = out[:, :, :V]     # padded columns (exactly 0) sliced off before use
    return out


def init_raw_params(key, embed_size, hidden_size, vocab_size):
    """Synthetic parameters in PyTorch layout (nn.LSTMCell / nn.Linear / nn.Embedding)."""
    ks = jax.random.split(key, 7)
    s = 0.1
    return {
        "w_ih_pt": s * jax.random.normal(ks[0], (4 * hidden_size, embed_size), jnp.float32),
        "w_hh_pt": s * jax.random.normal(ks[1], (4 * hidden_size, hidden_size), jnp.float32),
        "b_ih":    s * jax.random.normal(ks[2], (4 * hidden_size,), jnp.float32),
        "b_hh":    s * jax.random.normal(ks[3], (4 * hidden_size,), jnp.float32),
        "w_fc_pt": s * jax.random.normal(ks[4], (vocab_size, hidden_size), jnp.float32),
        "b_fc":    s * jax.random.normal(ks[5], (vocab_size,), jnp.float32),
        "embed":   s * jax.random.normal(ks[6], (vocab_size, embed_size), jnp.float32),
    }


def prepare_params(raw, weight_dtype=jnp.bfloat16):
    """PyTorch layout -> kernel layout.

    * transpose so the kernel computes x @ W
    * reorder gate columns [i,f,g,o] -> [i,f,o,g]
    * merge b_ih + b_hh
    * pad vocab dim of fc_out to a multiple of 128 (lane-dense output store)
    * weights default to bf16 (MXU-native); biases / accumulation / elementwise stay f32
    """
    H = raw["w_hh_pt"].shape[1]
    perm = jnp.concatenate([
        jnp.arange(0, 2 * H),        # i, f
        jnp.arange(3 * H, 4 * H),    # o
        jnp.arange(2 * H, 3 * H),    # g
    ])
    w_ih = raw["w_ih_pt"].T[:, perm]                       # (E, 4H)
    w_hh = raw["w_hh_pt"].T[:, perm]                       # (H, 4H)
    b = (raw["b_ih"] + raw["b_hh"])[perm][None, :]         # (1, 4H)
    w_fc = raw["w_fc_pt"].T                                # (H, V)
    b_fc = raw["b_fc"][None, :]                            # (1, V)

    V = w_fc.shape[1]
    Vp = ((V + 127) // 128) * 128
    if Vp != V:
        w_fc = jnp.pad(w_fc, ((0, 0), (0, Vp - V)))
        b_fc = jnp.pad(b_fc, ((0, 0), (0, Vp - V)))

    return {
        "embed": raw["embed"].astype(weight_dtype),
        "w_ih": w_ih.astype(weight_dtype),
        "w_hh": w_hh.astype(weight_dtype),
        "b": b.astype(jnp.float32),
        "w_fc": w_fc.astype(weight_dtype),
        "b_fc": b_fc.astype(jnp.float32),
    }


def _reference_forward(captions, features, raw):
    """Pure-JAX reference mirroring the PyTorch module exactly (f32, PyTorch layout)."""
    w_ih, w_hh = raw["w_ih_pt"], raw["w_hh_pt"]
    b = raw["b_ih"] + raw["b_hh"]
    w_fc, b_fc = raw["w_fc_pt"], raw["b_fc"]
    embed = raw["embed"]
    H = w_hh.shape[1]

    captions_embed = jnp.take(embed, captions, axis=0)
    x_seq = jnp.concatenate([features[None, :], captions_embed[:-1]], axis=0)

    def step(carry, x):
        h, c = carry
        gates = x[None, :] @ w_ih.T + h @ w_hh.T + b
        i = jax.nn.sigmoid(gates[:, 0 * H:1 * H])
        f = jax.nn.sigmoid(gates[:, 1 * H:2 * H])
        g = jnp.tanh(gates[:, 2 * H:3 * H])
        o = jax.nn.sigmoid(gates[:, 3 * H:4 * H])
        c_new = f * c + i * g
        h_new = o * jnp.tanh(c_new)
        out = h_new @ w_fc.T + b_fc
        return (h_new, c_new), out[0]

    h0 = jnp.zeros((1, H), jnp.float32)
    c0 = jnp.zeros((1, H), jnp.float32)
    _, outs = jax.lax.scan(step, (h0, c0), x_seq)
    return outs[None, :, :]


if __name__ == "__main__":
    # Small shapes consistent with the module: batch=1 (hard-coded in forward),
    # seq len T=8, embed_size=32, hidden_size=32, vocab_size=64.
    embed_size, hidden_size, vocab_size, T = 32, 32, 64, 8

    key = jax.random.PRNGKey(0)
    k_param, k_feat, k_cap = jax.random.split(key, 3)

    raw = init_raw_params(k_param, embed_size, hidden_size, vocab_size)
    features = jax.random.normal(k_feat, (embed_size,), jnp.float32)
    captions = jax.random.randint(k_cap, (T,), 0, vocab_size, dtype=jnp.int32)

    ref = jax.block_until_ready(_reference_forward(captions, features, raw))

    # f32 weights: tight match vs. the PyTorch-style reference.
    params_f32 = prepare_params(raw, weight_dtype=jnp.float32)
    out_f32 = jax.block_until_ready(decoder_rnn_forward(captions, features, params_f32))
    assert out_f32.shape == (1, T, vocab_size)
    assert jnp.allclose(out_f32, ref, atol=1e-4, rtol=1e-4), "f32 kernel mismatch"

    # bf16 weights (default, MXU-friendly on all gens); f32 accumulation + f32 elementwise.
    params_bf16 = prepare_params(raw)
    out_bf16 = jax.block_until_ready(decoder_rnn_forward(captions, features, params_bf16))
    assert out_bf16.shape == (1, T, vocab_size)
    assert jnp.allclose(out_bf16, ref, atol=2e-2, rtol=2e-2), "bf16 kernel mismatch"

    print("KERNEL_OK")
</pallas_src>

<mosaic_0001>
module attributes {stable_mosaic.version = 11 : i64} {
  func.func @_decoder_seq_kernel(%arg0: i32, %arg1: memref<8x32xf32, #tpu.memory_space<vmem>>, %arg2: memref<32x128xf32, #tpu.memory_space<vmem>>, %arg3: memref<32x128xf32, #tpu.memory_space<vmem>>, %arg4: memref<1x128xf32, #tpu.memory_space<vmem>>, %arg5: memref<32x128xf32, #tpu.memory_space<vmem>>, %arg6: memref<1x128xf32, #tpu.memory_space<vmem>>, %arg7: memref<1x8x128xf32, #tpu.memory_space<vmem>>, %arg8: memref<8x128xf32, #tpu.memory_space<vmem>>, %arg9: memref<8x32xf32, #tpu.memory_space<vmem>>, %arg10: memref<8x32xf32, #tpu.memory_space<vmem>>) attributes {dimension_semantics = [#tpu.dimension_semantics<arbitrary>], iteration_bounds = array<i64: 1>, scalar_prefetch = 0 : i64, scratch_operands = 3 : i64, tpu.core_type = #tpu.core_type<tc>, window_params = [{pipeline_mode = #tpu.pipeline_mode<synchronous>, transform_indices = @transform_0, window_bounds = array<i64: 8, 32>}, {pipeline_mode = #tpu.pipeline_mode<synchronous>, transform_indices = @transform_1, window_bounds = array<i64: 32, 128>}, {pipeline_mode = #tpu.pipeline_mode<synchronous>, transform_indices = @transform_2, window_bounds = array<i64: 32, 128>}, {pipeline_mode = #tpu.pipeline_mode<synchronous>, transform_indices = @transform_3, window_bounds = array<i64: 1, 128>}, {transform_indices = @transform_4, window_bounds = array<i64: 32, 128>}, {transform_indices = @transform_5, window_bounds = array<i64: 1, 128>}, {transform_indices = @transform_6, window_bounds = array<i64: 1, 8, 128>}]} {
    %c0_i32 = arith.constant 0 : i32
    %0 = arith.cmpi eq, %arg0, %c0_i32 : i32
    %1 = arith.extui %0 : i1 to i32
    %c0_i32_0 = arith.constant 0 : i32
    %2 = arith.cmpi ne, %1, %c0_i32_0 : i32
    scf.if %2 {
      %c0_9 = arith.constant 0 : index
      %c0_10 = arith.constant 0 : index
      %12 = vector.load %arg1[%c0_9, %c0_10] : memref<8x32xf32, #tpu.memory_space<vmem>>, vector<8x32xf32>
      %c0_11 = arith.constant 0 : index
      %c0_12 = arith.constant 0 : index
      %13 = vector.load %arg2[%c0_11, %c0_12] : memref<32x128xf32, #tpu.memory_space<vmem>>, vector<32x128xf32>
      %cst_13 = arith.constant dense<0.000000e+00> : vector<8x128xf32>
      %14 = tpu.matmul %12, %13, %cst_13 {dimension_numbers = #tpu.dot_dimension_numbers<[1], [0], [0], [1], [0, 0, 1, 1], [], []>} : vector<8x32xf32>, vector<32x128xf32>, vector<8x128xf32> -> vector<8x128xf32>
      %c0_14 = arith.constant 0 : index
      %c0_15 = arith.constant 0 : index
      %15 = vector.load %arg4[%c0_14, %c0_15] : memref<1x128xf32, #tpu.memory_space<vmem>>, vector<1x128xf32>
      %16 = vector.broadcast %15 : vector<1x128xf32> to vector<8x128xf32>
      %17 = arith.addf %14, %16 : vector<8x128xf32>
      %c0_16 = arith.constant 0 : index
      %c0_17 = arith.constant 0 : index
      %18 = vector.load %arg8[%c0_16, %c0_17] : memref<8x128xf32, #tpu.memory_space<vmem>>, vector<8x128xf32>
      tpu.vector_store %arg8[%c0_16, %c0_17], %17 {strides = array<i32>} : memref<8x128xf32, #tpu.memory_space<vmem>>, vector<8x128xf32>,
      %c0_18 = arith.constant 0 : index
      %c0_19 = arith.constant 0 : index
      %19 = vector.load %arg3[%c0_18, %c0_19] : memref<32x128xf32, #tpu.memory_space<vmem>>, vector<32x128xf32>
      %cst_20 = arith.constant 0.000000e+00 : f32
      %20 = vector.broadcast %cst_20 : f32 to vector<1x32xf32>
      %cst_21 = arith.constant 0.000000e+00 : f32
      %21 = vector.broadcast %cst_21 : f32 to vector<1x32xf32>
      %c0_i32_22 = arith.constant 0 : i32
      %22 = arith.index_cast %c0_i32_22 : i32 to index
      %c0_23 = arith.constant 0 : index
      %23 = vector.load %arg8[%22, %c0_23] : memref<8x128xf32, #tpu.memory_space<vmem>>, vector<1x128xf32>
      %cst_24 = arith.constant dense<0.000000e+00> : vector<1x128xf32>
      %24 = tpu.matmul %20, %19, %cst_24 {dimension_numbers = #tpu.dot_dimension_numbers<[1], [0], [0], [1], [0, 0, 1, 1], [], []>} : vector<1x32xf32>, vector<32x128xf32>, vector<1x128xf32> -> vector<1x128xf32>
      %25 = arith.addf %23, %24 : vector<1x128xf32>
      %26 = vector.extract_strided_slice %25 {offsets = [0, 0], sizes = [1, 96], strides = [1, 1]} : vector<1x128xf32> to vector<1x96xf32>
      %27 = arith.negf %26 : vector<1x96xf32>
      %28 = math.exp %27 : vector<1x96xf32>
      %cst_25 = arith.constant 1.000000e+00 : f32
      %29 = vector.broadcast %cst_25 : f32 to vector<1x96xf32>
      %30 = arith.addf %29, %28 : vector<1x96xf32>
      %31 = arith.divf %29, %30 : vector<1x96xf32>
      %32 = vector.extract_strided_slice %25 {offsets = [0, 96], sizes = [1, 32], strides = [1, 1]} : vector<1x128xf32> to vector<1x32xf32>
      %33 = math.tanh %32 : vector<1x32xf32>
      %34 = vector.extract_strided_slice %31 {offsets = [0, 0], sizes = [1, 32], strides = [1, 1]} : vector<1x96xf32> to vector<1x32xf32>
      %35 = vector.extract_strided_slice %31 {offsets = [0, 32], sizes = [1, 32], strides = [1, 1]} : vector<1x96xf32> to vector<1x32xf32>
      %36 = vector.extract_strided_slice %31 {offsets = [0, 64], sizes = [1, 32], strides = [1, 1]} : vector<1x96xf32> to vector<1x32xf32>
      %37 = arith.mulf %35, %21 : vector<1x32xf32>
      %38 = arith.mulf %34, %33 : vector<1x32xf32>
      %39 = arith.addf %37, %38 : vector<1x32xf32>
      %40 = math.tanh %39 : vector<1x32xf32>
      %41 = arith.mulf %36, %40 : vector<1x32xf32>
      %42 = arith.index_cast %c0_i32_22 : i32 to index
      %c0_26 = arith.constant 0 : index
      %43 = vector.load %arg9[%42, %c0_26] : memref<8x32xf32, #tpu.memory_space<vmem>>, vector<1x32xf32>
      tpu.vector_store %arg9[%42, %c0_26], %41 {strides = array<i32>} : memref<8x32xf32, #tpu.memory_space<vmem>>, vector<1x32xf32>,
      %c1_i32 = arith.constant 1 : i32
      %44 = arith.index_cast %c1_i32 : i32 to index
      %c0_27 = arith.constant 0 : index
      %45 = vector.load %arg8[%44, %c0_27] : memref<8x128xf32, #tpu.memory_space<vmem>>, vector<1x128xf32>
      %cst_28 = arith.constant dense<0.000000e+00> : vector<1x128xf32>
      %46 = tpu.matmul %41, %19, %cst_28 {dimension_numbers = #tpu.dot_dimension_numbers<[1], [0], [0], [1], [0, 0, 1, 1], [], []>} : vector<1x32xf32>, vector<32x128xf32>, vector<1x128xf32> -> vector<1x128xf32>
      %47 = arith.addf %45, %46 : vector<1x128xf32>
      %48 = vector.extract_strided_slice %47 {offsets = [0, 0], sizes = [1, 96], strides = [1, 1]} : vector<1x128xf32> to vector<1x96xf32>
      %49 = arith.negf %48 : vector<1x96xf32>
      %50 = math.exp %49 : vector<1x96xf32>
      %cst_29 = arith.constant 1.000000e+00 : f32
      %51 = vector.broadcast %cst_29 : f32 to vector<1x96xf32>
      %52 = arith.addf %51, %50 : vector<1x96xf32>
      %53 = arith.divf %51, %52 : vector<1x96xf32>
      %54 = vector.extract_strided_slice %47 {offsets = [0, 96], sizes = [1, 32], strides = [1, 1]} : vector<1x128xf32> to vector<1x32xf32>
      %55 = math.tanh %54 : vector<1x32xf32>
      %56 = vector.extract_strided_slice %53 {offsets = [0, 0], sizes = [1, 32], strides = [1, 1]} : vector<1x96xf32> to vector<1x32xf32>
      %57 = vector.extract_strided_slice %53 {offsets = [0, 32], sizes = [1, 32], strides = [1, 1]} : vector<1x96xf32> to vector<1x32xf32>
      %58 = vector.extract_strided_slice %53 {offsets = [0, 64], sizes = [1, 32], strides = [1, 1]} : vector<1x96xf32> to vector<1x32xf32>
      %59 = arith.mulf %57, %39 : vector<1x32xf32>
      %60 = arith.mulf %56, %55 : vector<1x32xf32>
      %61 = arith.addf %59, %60 : vector<1x32xf32>
      %62 = math.tanh %61 : vector<1x32xf32>
      %63 = arith.mulf %58, %62 : vector<1x32xf32>
      %64 = arith.index_cast %c1_i32 : i32 to index
      %c0_30 = arith.constant 0 : index
      %65 = vector.load %arg9[%64, %c0_30] : memref<8x32xf32, #tpu.memory_space<vmem>>, vector<1x32xf32>
      tpu.vector_store %arg9[%64, %c0_30], %63 {strides = array<i32>} : memref<8x32xf32, #tpu.memory_space<vmem>>, vector<1x32xf32>,
      %c2_i32 = arith.constant 2 : i32
      %66 = arith.index_cast %c2_i32 : i32 to index
      %c0_31 = arith.constant 0 : index
      %67 = vector.load %arg8[%66, %c0_31] : memref<8x128xf32, #tpu.memory_space<vmem>>, vector<1x128xf32>
      %cst_32 = arith.constant dense<0.000000e+00> : vector<1x128xf32>
      %68 = tpu.matmul %63, %19, %cst_32 {dimension_numbers = #tpu.dot_dimension_numbers<[1], [0], [0], [1], [0, 0, 1, 1], [], []>} : vector<1x32xf32>, vector<32x128xf32>, vector<1x128xf32> -> vector<1x128xf32>
      %69 = arith.addf %67, %68 : vector<1x128xf32>
      %70 = vector.extract_strided_slice %69 {offsets = [0, 0], sizes = [1, 96], strides = [1, 1]} : vector<1x128xf32> to vector<1x96xf32>
      %71 = arith.negf %70 : vector<1x96xf32>
      %72 = math.exp %71 : vector<1x96xf32>
      %cst_33 = arith.constant 1.000000e+00 : f32
      %73 = vector.broadcast %cst_33 : f32 to vector<1x96xf32>
      %74 = arith.addf %73, %72 : vector<1x96xf32>
      %75 = arith.divf %73, %74 : vector<1x96xf32>
      %76 = vector.extract_strided_slice %69 {offsets = [0, 96], sizes = [1, 32], strides = [1, 1]} : vector<1x128xf32> to vector<1x32xf32>
      %77 = math.tanh %76 : vector<1x32xf32>
      %78 = vector.extract_strided_slice %75 {offsets = [0, 0], sizes = [1, 32], strides = [1, 1]} : vector<1x96xf32> to vector<1x32xf32>
      %79 = vector.extract_strided_slice %75 {offsets = [0, 32], sizes = [1, 32], strides = [1, 1]} : vector<1x96xf32> to vector<1x32xf32>
      %80 = vector.extract_strided_slice %75 {offsets = [0, 64], sizes = [1, 32], strides = [1, 1]} : vector<1x96xf32> to vector<1x32xf32>
      %81 = arith.mulf %79, %61 : vector<1x32xf32>
      %82 = arith.mulf %78, %77 : vector<1x32xf32>
      %83 = arith.addf %81, %82 : vector<1x32xf32>
      %84 = math.tanh %83 : vector<1x32xf32>
      %85 = arith.mulf %80, %84 : vector<1x32xf32>
      %86 = arith.index_cast %c2_i32 : i32 to index
      %c0_34 = arith.constant 0 : index
      %87 = vector.load %arg9[%86, %c0_34] : memref<8x32xf32, #tpu.memory_space<vmem>>, vector<1x32xf32>
      tpu.vector_store %arg9[%86, %c0_34], %85 {strides = array<i32>} : memref<8x32xf32, #tpu.memory_space<vmem>>, vector<1x32xf32>,
      %c3_i32 = arith.constant 3 : i32
      %88 = arith.index_cast %c3_i32 : i32 to index
      %c0_35 = arith.constant 0 : index
      %89 = vector.load %arg8[%88, %c0_35] : memref<8x128xf32, #tpu.memory_space<vmem>>, vector<1x128xf32>
      %cst_36 = arith.constant dense<0.000000e+00> : vector<1x128xf32>
      %90 = tpu.matmul %85, %19, %cst_36 {dimension_numbers = #tpu.dot_dimension_numbers<[1], [0], [0], [1], [0, 0, 1, 1], [], []>} : vector<1x32xf32>, vector<32x128xf32>, vector<1x128xf32> -> vector<1x128xf32>
      %91 = arith.addf %89, %90 : vector<1x128xf32>
      %92 = vector.extract_strided_slice %91 {offsets = [0, 0], sizes = [1, 96], strides = [1, 1]} : vector<1x128xf32> to vector<1x96xf32>
      %93 = arith.negf %92 : vector<1x96xf32>
      %94 = math.exp %93 : vector<1x96xf32>
      %cst_37 = arith.constant 1.000000e+00 : f32
      %95 = vector.broadcast %cst_37 : f32 to vector<1x96xf32>
      %96 = arith.addf %95, %94 : vector<1x96xf32>
      %97 = arith.divf %95, %96 : vector<1x96xf32>
      %98 = vector.extract_strided_slice %91 {offsets = [0, 96], sizes = [1, 32], strides = [1, 1]} : vector<1x128xf32> to vector<1x32xf32>
      %99 = math.tanh %98 : vector<1x32xf32>
      %100 = vector.extract_strided_slice %97 {offsets = [0, 0], sizes = [1, 32], strides = [1, 1]} : vector<1x96xf32> to vector<1x32xf32>
      %101 = vector.extract_strided_slice %97 {offsets = [0, 32], sizes = [1, 32], strides = [1, 1]} : vector<1x96xf32> to vector<1x32xf32>
      %102 = vector.extract_strided_slice %97 {offsets = [0, 64], sizes = [1, 32], strides = [1, 1]} : vector<1x96xf32> to vector<1x32xf32>
      %103 = arith.mulf %101, %83 : vector<1x32xf32>
      %104 = arith.mulf %100, %99 : vector<1x32xf32>
      %105 = arith.addf %103, %104 : vector<1x32xf32>
      %106 = math.tanh %105 : vector<1x32xf32>
      %107 = arith.mulf %102, %106 : vector<1x32xf32>
      %108 = arith.index_cast %c3_i32 : i32 to index
      %c0_38 = arith.constant 0 : index
      %109 = vector.load %arg9[%108, %c0_38] : memref<8x32xf32, #tpu.memory_space<vmem>>, vector<1x32xf32>
      tpu.vector_store %arg9[%108, %c0_38], %107 {strides = array<i32>} : memref<8x32xf32, #tpu.memory_space<vmem>>, vector<1x32xf32>,
      %c4_i32 = arith.constant 4 : i32
      %110 = arith.index_cast %c4_i32 : i32 to index
      %c0_39 = arith.constant 0 : index
      %111 = vector.load %arg8[%110, %c0_39] : memref<8x128xf32, #tpu.memory_space<vmem>>, vector<1x128xf32>
      %cst_40 = arith.constant dense<0.000000e+00> : vector<1x128xf32>
      %112 = tpu.matmul %107, %19, %cst_40 {dimension_numbers = #tpu.dot_dimension_numbers<[1], [0], [0], [1], [0, 0, 1, 1], [], []>} : vector<1x32xf32>, vector<32x128xf32>, vector<1x128xf32> -> vector<1x128xf32>
      %113 = arith.addf %111, %112 : vector<1x128xf32>
      %114 = vector.extract_strided_slice %113 {offsets = [0, 0], sizes = [1, 96], strides = [1, 1]} : vector<1x128xf32> to vector<1x96xf32>
      %115 = arith.negf %114 : vector<1x96xf32>
      %116 = math.exp %115 : vector<1x96xf32>
      %cst_41 = arith.constant 1.000000e+00 : f32
      %117 = vector.broadcast %cst_41 : f32 to vector<1x96xf32>
      %118 = arith.addf %117, %116 : vector<1x96xf32>
      %119 = arith.divf %117, %118 : vector<1x96xf32>
      %120 = vector.extract_strided_slice %113 {offsets = [0, 96], sizes = [1, 32], strides = [1, 1]} : vector<1x128xf32> to vector<1x32xf32>
      %121 = math.tanh %120 : vector<1x32xf32>
      %122 = vector.extract_strided_slice %119 {offsets = [0, 0], sizes = [1, 32], strides = [1, 1]} : vector<1x96xf32> to vector<1x32xf32>
      %123 = vector.extract_strided_slice %119 {offsets = [0, 32], sizes = [1, 32], strides = [1, 1]} : vector<1x96xf32> to vector<1x32xf32>
      %124 = vector.extract_strided_slice %119 {offsets = [0, 64], sizes = [1, 32], strides = [1, 1]} : vector<1x96xf32> to vector<1x32xf32>
      %125 = arith.mulf %123, %105 : vector<1x32xf32>
      %126 = arith.mulf %122, %121 : vector<1x32xf32>
      %127 = arith.addf %125, %126 : vector<1x32xf32>
      %128 = math.tanh %127 : vector<1x32xf32>
      %129 = arith.mulf %124, %128 : vector<1x32xf32>
      %130 = arith.index_cast %c4_i32 : i32 to index
      %c0_42 = arith.constant 0 : index
      %131 = vector.load %arg9[%130, %c0_42] : memref<8x32xf32, #tpu.memory_space<vmem>>, vector<1x32xf32>
      tpu.vector_store %arg9[%130, %c0_42], %129 {strides = array<i32>} : memref<8x32xf32, #tpu.memory_space<vmem>>, vector<1x32xf32>,
      %c5_i32 = arith.constant 5 : i32
      %132 = arith.index_cast %c5_i32 : i32 to index
      %c0_43 = arith.constant 0 : index
      %133 = vector.load %arg8[%132, %c0_43] : memref<8x128xf32, #tpu.memory_space<vmem>>, vector<1x128xf32>
      %cst_44 = arith.constant dense<0.000000e+00> : vector<1x128xf32>
      %134 = tpu.matmul %129, %19, %cst_44 {dimension_numbers = #tpu.dot_dimension_numbers<[1], [0], [0], [1], [0, 0, 1, 1], [], []>} : vector<1x32xf32>, vector<32x128xf32>, vector<1x128xf32> -> vector<1x128xf32>
      %135 = arith.addf %133, %134 : vector<1x128xf32>
      %136 = vector.extract_strided_slice %135 {offsets = [0, 0], sizes = [1, 96], strides = [1, 1]} : vector<1x128xf32> to vector<1x96xf32>
      %137 = arith.negf %136 : vector<1x96xf32>
      %138 = math.exp %137 : vector<1x96xf32>
      %cst_45 = arith.constant 1.000000e+00 : f32
      %139 = vector.broadcast %cst_45 : f32 to vector<1x96xf32>
      %140 = arith.addf %139, %138 : vector<1x96xf32>
      %141 = arith.divf %139, %140 : vector<1x96xf32>
      %142 = vector.extract_strided_slice %135 {offsets = [0, 96], sizes = [1, 32], strides = [1, 1]} : vector<1x128xf32> to vector<1x32xf32>
      %143 = math.tanh %142 : vector<1x32xf32>
      %144 = vector.extract_strided_slice %141 {offsets = [0, 0], sizes = [1, 32], strides = [1, 1]} : vector<1x96xf32> to vector<1x32xf32>
      %145 = vector.extract_strided_slice %141 {offsets = [0, 32], sizes = [1, 32], strides = [1, 1]} : vector<1x96xf32> to vector<1x32xf32>
      %146 = vector.extract_strided_slice %141 {offsets = [0, 64], sizes = [1, 32], strides = [1, 1]} : vector<1x96xf32> to vector<1x32xf32>
      %147 = arith.mulf %145, %127 : vector<1x32xf32>
      %148 = arith.mulf %144, %143 : vector<1x32xf32>
      %149 = arith.addf %147, %148 : vector<1x32xf32>
      %150 = math.tanh %149 : vector<1x32xf32>
      %151 = arith.mulf %146, %150 : vector<1x32xf32>
      %152 = arith.index_cast %c5_i32 : i32 to index
      %c0_46 = arith.constant 0 : index
      %153 = vector.load %arg9[%152, %c0_46] : memref<8x32xf32, #tpu.memory_space<vmem>>, vector<1x32xf32>
      tpu.vector_store %arg9[%152, %c0_46], %151 {strides = array<i32>} : memref<8x32xf32, #tpu.memory_space<vmem>>, vector<1x32xf32>,
      %c6_i32 = arith.constant 6 : i32
      %154 = arith.index_cast %c6_i32 : i32 to index
      %c0_47 = arith.constant 0 : index
      %155 = vector.load %arg8[%154, %c0_47] : memref<8x128xf32, #tpu.memory_space<vmem>>, vector<1x128xf32>
      %cst_48 = arith.constant dense<0.000000e+00> : vector<1x128xf32>
      %156 = tpu.matmul %151, %19, %cst_48 {dimension_numbers = #tpu.dot_dimension_numbers<[1], [0], [0], [1], [0, 0, 1, 1], [], []>} : vector<1x32xf32>, vector<32x128xf32>, vector<1x128xf32> -> vector<1x128xf32>
      %157 = arith.addf %155, %156 : vector<1x128xf32>
      %158 = vector.extract_strided_slice %157 {offsets = [0, 0], sizes = [1, 96], strides = [1, 1]} : vector<1x128xf32> to vector<1x96xf32>
      %159 = arith.negf %158 : vector<1x96xf32>
      %160 = math.exp %159 : vector<1x96xf32>
      %cst_49 = arith.constant 1.000000e+00 : f32
      %161 = vector.broadcast %cst_49 : f32 to vector<1x96xf32>
      %162 = arith.addf %161, %160 : vector<1x96xf32>
      %163 = arith.divf %161, %162 : vector<1x96xf32>
      %164 = vector.extract_strided_slice %157 {offsets = [0, 96], sizes = [1, 32], strides = [1, 1]} : vector<1x128xf32> to vector<1x32xf32>
      %165 = math.tanh %164 : vector<1x32xf32>
      %166 = vector.extract_strided_slice %163 {offsets = [0, 0], sizes = [1, 32], strides = [1, 1]} : vector<1x96xf32> to vector<1x32xf32>
      %167 = vector.extract_strided_slice %163 {offsets = [0, 32], sizes = [1, 32], strides = [1, 1]} : vector<1x96xf32> to vector<1x32xf32>
      %168 = vector.extract_strided_slice %163 {offsets = [0, 64], sizes = [1, 32], strides = [1, 1]} : vector<1x96xf32> to vector<1x32xf32>
      %169 = arith.mulf %167, %149 : vector<1x32xf32>
      %170 = arith.mulf %166, %165 : vector<1x32xf32>
      %171 = arith.addf %169, %170 : vector<1x32xf32>
      %172 = math.tanh %171 : vector<1x32xf32>
      %173 = arith.mulf %168, %172 : vector<1x32xf32>
      %174 = arith.index_cast %c6_i32 : i32 to index
      %c0_50 = arith.constant 0 : index
      %175 = vector.load %arg9[%174, %c0_50] : memref<8x32xf32, #tpu.memory_space<vmem>>, vector<1x32xf32>
      tpu.vector_store %arg9[%174, %c0_50], %173 {strides = array<i32>} : memref<8x32xf32, #tpu.memory_space<vmem>>, vector<1x32xf32>,
      %c7_i32 = arith.constant 7 : i32
      %176 = arith.index_cast %c7_i32 : i32 to index
      %c0_51 = arith.constant 0 : index
      %177 = vector.load %arg8[%176, %c0_51] : memref<8x128xf32, #tpu.memory_space<vmem>>, vector<1x128xf32>
      %cst_52 = arith.constant dense<0.000000e+00> : vector<1x128xf32>
      %178 = tpu.matmul %173, %19, %cst_52 {dimension_numbers = #tpu.dot_dimension_numbers<[1], [0], [0], [1], [0, 0, 1, 1], [], []>} : vector<1x32xf32>, vector<32x128xf32>, vector<1x128xf32> -> vector<1x128xf32>
      %179 = arith.addf %177, %178 : vector<1x128xf32>
      %180 = vector.extract_strided_slice %179 {offsets = [0, 0], sizes = [1, 96], strides = [1, 1]} : vector<1x128xf32> to vector<1x96xf32>
      %181 = arith.negf %180 : vector<1x96xf32>
      %182 = math.exp %181 : vector<1x96xf32>
      %cst_53 = arith.constant 1.000000e+00 : f32
      %183 = vector.broadcast %cst_53 : f32 to vector<1x96xf32>
      %184 = arith.addf %183, %182 : vector<1x96xf32>
      %185 = arith.divf %183, %184 : vector<1x96xf32>
      %186 = vector.extract_strided_slice %179 {offsets = [0, 96], sizes = [1, 32], strides = [1, 1]} : vector<1x128xf32> to vector<1x32xf32>
      %187 = math.tanh %186 : vector<1x32xf32>
      %188 = vector.extract_strided_slice %185 {offsets = [0, 0], sizes = [1, 32], strides = [1, 1]} : vector<1x96xf32> to vector<1x32xf32>
      %189 = vector.extract_strided_slice %185 {offsets = [0, 32], sizes = [1, 32], strides = [1, 1]} : vector<1x96xf32> to vector<1x32xf32>
      %190 = vector.extract_strided_slice %185 {offsets = [0, 64], sizes = [1, 32], strides = [1, 1]} : vector<1x96xf32> to vector<1x32xf32>
      %191 = arith.mulf %189, %171 : vector<1x32xf32>
      %192 = arith.mulf %188, %187 : vector<1x32xf32>
      %193 = arith.addf %191, %192 : vector<1x32xf32>
      %194 = math.tanh %193 : vector<1x32xf32>
      %195 = arith.mulf %190, %194 : vector<1x32xf32>
      %196 = arith.index_cast %c7_i32 : i32 to index
      %c0_54 = arith.constant 0 : index
      %197 = vector.load %arg9[%196, %c0_54] : memref<8x32xf32, #tpu.memory_space<vmem>>, vector<1x32xf32>
      tpu.vector_store %arg9[%196, %c0_54], %195 {strides = array<i32>} : memref<8x32xf32, #tpu.memory_space<vmem>>, vector<1x32xf32>,
      %c8_i32 = arith.constant 8 : i32
      %c0_55 = arith.constant 0 : index
      %c0_56 = arith.constant 0 : index
      %198 = vector.load %arg9[%c0_55, %c0_56] : memref<8x32xf32, #tpu.memory_space<vmem>>, vector<8x32xf32>
      %c0_57 = arith.constant 0 : index
      %c0_58 = arith.constant 0 : index
      %199 = vector.load %arg10[%c0_57, %c0_58] : memref<8x32xf32, #tpu.memory_space<vmem>>, vector<8x32xf32>
      tpu.vector_store %arg10[%c0_57, %c0_58], %198 {strides = array<i32>} : memref<8x32xf32, #tpu.memory_space<vmem>>, vector<8x32xf32>,
    } else {
    }
    %c0 = arith.constant 0 : index
    %c0_1 = arith.constant 0 : index
    %3 = vector.load %arg10[%c0, %c0_1] : memref<8x32xf32, #tpu.memory_space<vmem>>, vector<8x32xf32>
    %c0_2 = arith.constant 0 : index
    %c0_3 = arith.constant 0 : index
    %4 = vector.load %arg5[%c0_2, %c0_3] : memref<32x128xf32, #tpu.memory_space<vmem>>, vector<32x128xf32>
    %cst = arith.constant dense<0.000000e+00> : vector<8x128xf32>
    %5 = tpu.matmul %3, %4, %cst {dimension_numbers = #tpu.dot_dimension_numbers<[1], [0], [0], [1], [0, 0, 1, 1], [], []>} : vector<8x32xf32>, vector<32x128xf32>, vector<8x128xf32> -> vector<8x128xf32>
    %c0_4 = arith.constant 0 : index
    %c0_5 = arith.constant 0 : index
    %6 = vector.load %arg6[%c0_4, %c0_5] : memref<1x128xf32, #tpu.memory_space<vmem>>, vector<1x128xf32>
    %7 = vector.broadcast %6 : vector<1x128xf32> to vector<8x128xf32>
    %8 = arith.addf %5, %7 : vector<8x128xf32>
    %c0_6 = arith.constant 0 : index
    %c0_7 = arith.constant 0 : index
    %c0_8 = arith.constant 0 : index
    %9 = vector.load %arg7[%c0_6, %c0_7, %c0_8] : memref<1x8x128xf32, #tpu.memory_space<vmem>>, vector<1x8x128xf32>
    %10 = vector.shape_cast %9 : vector<1x8x128xf32> to vector<8x128xf32>
    %11 = vector.shape_cast %8 : vector<8x128xf32> to vector<1x8x128xf32>
    tpu.vector_store %arg7[%c0_6, %c0_7, %c0_8], %11 {strides = array<i32>} : memref<1x8x128xf32, #tpu.memory_space<vmem>>, vector<1x8x128xf32>,
    return
  }
  func.func @transform_0(%arg0: i32) -> (i32, i32) {
    %c0_i32 = arith.constant 0 : i32
    %c0_i32_0 = arith.constant 0 : i32
    %c0_i32_1 = arith.constant 0 : i32
    return %c0_i32, %c0_i32_0 : i32, i32
  }
  func.func @transform_1(%arg0: i32) -> (i32, i32) {
    %c0_i32 = arith.constant 0 : i32
    %c0_i32_0 = arith.constant 0 : i32
    %c0_i32_1 = arith.constant 0 : i32
    return %c0_i32, %c0_i32_0 : i32, i32
  }
  func.func @transform_2(%arg0: i32) -> (i32, i32) {
    %c0_i32 = arith.constant 0 : i32
    %c0_i32_0 = arith.constant 0 : i32
    %c0_i32_1 = arith.constant 0 : i32
    return %c0_i32, %c0_i32_0 : i32, i32
  }
  func.func @transform_3(%arg0: i32) -> (i32, i32) {
    %c0_i32 = arith.constant 0 : i32
    %c0_i32_0 = arith.constant 0 : i32
    %c0_i32_1 = arith.constant 0 : i32
    return %c0_i32, %c0_i32_0 : i32, i32
  }
  func.func @transform_4(%arg0: i32) -> (i32, i32) {
    %c0_i32 = arith.constant 0 : i32
    %c0_i32_0 = arith.constant 0 : i32
    return %c0_i32, %arg0 : i32, i32
  }
  func.func @transform_5(%arg0: i32) -> (i32, i32) {
    %c0_i32 = arith.constant 0 : i32
    %c0_i32_0 = arith.constant 0 : i32
    return %c0_i32, %arg0 : i32, i32
  }
  func.func @transform_6(%arg0: i32) -> (i32, i32, i32) {
    %c0_i32 = arith.constant 0 : i32
    %c0_i32_0 = arith.constant 0 : i32
    %c0_i32_1 = arith.constant 0 : i32
    return %c0_i32, %c0_i32_0, %arg0 : i32, i32, i32
  }
}

</mosaic_0001>

<bundles_post_ra>
// kernel: tpu_custom_call.1
= control target key start
LH: loop header
LB: loop body
LE: loop exit
PB: predicated region body
PF: predicated region fallthrough
CT: control target
= control target key end

     0   :  { %11 = vsyncpa [#allocation6], 0  ;;  %s1693_s0 = inlined_call_operand.hbm [shape: f32[8,32], index: 0, kind: input, shape index: {}]   ;;  %s1694_s1 = inlined_call_operand.hbm [shape: f32[32,128], index: 1, kind: input, shape index: {}]   ;;  %s1695_s2 = inlined_call_operand.hbm [shape: f32[32,128], index: 2, kind: input, shape index: {}]   ;;  %s1696_s3 = inlined_call_operand.vmem [shape: f32[1,128], index: 3, kind: input, shape index: {}]   ;;  %s1697_s4 = inlined_call_operand.hbm [shape: f32[32,128], index: 4, kind: input, shape index: {}]   ;;  %s1698_s5 = inlined_call_operand.vmem [shape: f32[1,128], index: 5, kind: input, shape index: {}]   ;;  %s1699_s6 = inlined_call_operand.hbm [shape: f32[1,8,128], index: 6, kind: output, shape index: {}]  }
   0x1   :  { %12 = vsyncpa [#allocation9], 0 }
   0x2   :  { %13 = vsyncpa [#allocation12], 0 }
   0x3   :  { %14 = vsyncpa [#allocation7], 0  ;;  %s1466_s21 = smov [#allocation8]  }
   0x4   :  { %s30_s22 = sshll.u32 %s1466_s21, 4  ;;  %s31_s22 = int_to_ptr.vmem [resolvable:$true] %s30_s22 }
   0x5   :  { %s1366_s23 = scalar_lea.vmem %s31_s22, 512  ;;  %p1371_p1 = scmp.lt.s32.totalorder %s31_s22, %s31_s22 }
   0x6   :  { %p1367_p0 = scmp.ne.s32.totalorder %s31_s22, %s1366_s23  ;;  %p1372_p2 = scmp.lt.s32.totalorder %s1366_s23, %s1366_s23 }
   0x8   :  { %p1373_p3 = por %p1372_p2, %p1371_p1 }
   0xa   :  { %p1374_p4 = pnand %p1373_p3, %p1367_p0 }
   0xc   :  { %1377 = shalt.err (!%p1374_p4)
}
   0xd   :  { %s1467_s24 = smov 128   ;;  %s1468_s25 = smov 8  }
   0xe   :  { %36 = dma.hbm_to_vmem [thread:$0]  %s1694_s1, 512, %s31_s22, [#allocation9], %s1467_s24, %s1467_s24, %s1468_s25  }
   0xf   :  { %s1469_s28 = smov [#allocation5]   ;;  %s1470_s30 = smov [#allocation10]  }
  0x10   :  { %s21_s29 = sshll.u32 %s1469_s28, 4  ;;  %s42_s7 = sshll.u32 %s1470_s30, 4  ;;  %s22_s29 = int_to_ptr.vmem [resolvable:$true] %s21_s29  ;;  %s43_s7 = int_to_ptr.vmem [resolvable:$true] %s42_s7 }
  0x11   :  { %s1386_s8 = scalar_lea.vmem %s22_s29, 128  ;;  %p1391_p6 = scmp.lt.s32.totalorder %s22_s29, %s22_s29 }
  0x12   :  { %p1387_p5 = scmp.ne.s32.totalorder %s22_s29, %s1386_s8  ;;  %p1392_p7 = scmp.lt.s32.totalorder %s1386_s8, %s1386_s8 }
  0x14   :  { %p1393_p8 = por %p1392_p7, %p1391_p6 }
  0x16   :  { %p1394_p9 = pnand %p1393_p8, %p1387_p5 }
  0x18   :  { %1397 = shalt.err (!%p1394_p9)
}
  0x19   :  { %24 = dma.hbm_to_vmem [thread:$0]  %s1693_s0, 128, %s22_s29, [#allocation6]  }
  0x1a   :  { %s1406_s11 = scalar_lea.vmem %s43_s7, 512  ;;  %p1411_p11 = scmp.lt.s32.totalorder %s43_s7, %s43_s7 }
  0x1b   :  { %p1407_p10 = scmp.ne.s32.totalorder %s43_s7, %s1406_s11  ;;  %p1412_p12 = scmp.lt.s32.totalorder %s1406_s11, %s1406_s11 }
  0x1d   :  { %p1413_p13 = por %p1412_p12, %p1411_p11 }
  0x1f   :  { %p1414_p0 = pnand %p1413_p13, %p1407_p10 }
  0x21   :  { %1417 = shalt.err (!%p1414_p0)
}
  0x22   :  { %48 = dma.hbm_to_vmem [thread:$0]  %s1695_s2, 512, %s43_s7, [#allocation9], %s1467_s24, %s1467_s24, %s1468_s25  }
  0x23   :  { %s1471_s13 = smov [#allocation11]  }
  0x24   :  { %s56_s14 = sshll.u32 %s1471_s13, 4  ;;  %s57_s14 = int_to_ptr.vmem [resolvable:$true] %s56_s14 }
  0x25   :  { %s1426_s15 = scalar_lea.vmem %s57_s14, 512  ;;  %p1431_p2 = scmp.lt.s32.totalorder %s57_s14, %s57_s14 }
  0x26   :  { %p1427_p1 = scmp.ne.s32.totalorder %s57_s14, %s1426_s15  ;;  %p1432_p3 = scmp.lt.s32.totalorder %s1426_s15, %s1426_s15 }
  0x28   :  { %p1433_p4 = por %p1432_p3, %p1431_p2 }
  0x2a   :  { %p1434_p5 = pnand %p1433_p4, %p1427_p1 }
  0x2c   :  { %1437 = shalt.err (!%p1434_p5)
}
  0x2d   :  { %62 = dma.hbm_to_vmem [thread:$0]  %s1697_s4, 512, %s57_s14, [#allocation12], %s1467_s24, %s1467_s24, %s1468_s25  }
  0x2e   :  { %1458 = dma.done.wait [#allocation6], 128  }
  0x2f   :  { %1459 = vsyncadd [#allocation6], 4294967168 }
  0x30   :  { %1460 = dma.done.wait [#allocation9], 1024  }
  0x31   :  { %1461 = vsyncadd [#allocation9], 4294966272 }
  0x32   :  { %1462 = dma.done.wait [#allocation12], 512  }
  0x33   :  { %1463 = vsyncadd [#allocation12], 4294966784  ;;  %v1472_v0 = vmov 0.0   ;;  %vm1473_vm0 = vmmov 0   ;;  %v85_v1 = vld [vmem:[#allocation8 + $0x18] sm:$0xff]  ;;  %v84_v2 = vld [vmem:[#allocation8 + $0x10] sm:$0xff] }
  0x34   :  { %1173 = vmatprep.subr.mxu0 %v1472_v0  ;;  %1181 = vmatprep.mubr.msk.f32.mxu0 %vm1473_vm0, %v1472_v0  ;;  %v1539_v3 = vld [vmem:[#allocation10 + $0x18] sm:$0xff]  ;;  %v83_v4 = vld [vmem:[#allocation8 + $0x8] sm:$0xff]  ;;  %v1543_v5 = vld [vmem:[#allocation10 + $0x10] sm:$0xff]  ;;  %vm93_vm1 = vcmask 261120   ;;  %s1474_s17 = smov 32   ;;  %vm275_vm2 = vcmask 253952  }
  0x35   :  { %1184 = vmatprep.subr.mxu1 %v1472_v0  ;;  %1192 = vmatprep.mubr.msk.f32.mxu1 %vm1473_vm0, %v1472_v0  ;;  %v1546_v6 = vld [vmem:[#allocation10 + $0x8] sm:$0xff]  ;;  %v82_v7 = vld [vmem:[#allocation8] sm:$0xff]  ;;  %v81_v8 = vld [vmem:[#allocation5] sm:$0xff]  ;;  %s1476_s20 = smov [#allocation13]  }
  0x36   :  { %1174 = vmatpush3.msra.mxu0 %v85_v1  ;;  %1185 = vmatpush3.msra.mxu1 %v1539_v3  ;;  %v1551_v9 = vld [vmem:[#allocation10] sm:$0xff]  ;;  %s1093_s21 = sshll.u32 %s1476_s20, 4  ;;  %s1094_s21 = int_to_ptr.vmem [resolvable:$true] %s1093_s21 }
  0x37   :  { %1175 = vmatprep.subr.mxu0 %v1472_v0  ;;  %1186 = vmatprep.subr.mxu1 %v1472_v0  ;;  %v1104_v10 = vld [vmem:[%s1696_s3] ss:$0 sm:$0xff]  ;;  %s1475_s3 = smov 64   ;;  %s1438_s22 = scalar_lea.vmem %s1094_s21, 128 }
  0x38   :  { %1176 = vmatpush3.msra.mxu0 %v84_v2  ;;  %1187 = vmatpush3.msra.mxu1 %v1543_v5  ;;  %p1439_p6 = scmp.ne.s32.totalorder %s1094_s21, %s1438_s22  ;;  %p1443_p7 = scmp.lt.s32.totalorder %s1094_s21, %s1094_s21 }
  0x39   :  { %1177 = vmatprep.subr.mxu0 %v1472_v0  ;;  %1188 = vmatprep.subr.mxu1 %v1472_v0  ;;  %p1444_p8 = scmp.lt.s32.totalorder %s1438_s22, %s1438_s22 }
  0x3a   :  { %1178 = vmatpush3.msra.mxu0 %v83_v4  ;;  %1189 = vmatpush3.msra.mxu1 %v1546_v6 }
  0x3b   :  { %1179 = vmatprep.subr.mxu0 %v1472_v0  ;;  %1190 = vmatprep.subr.mxu1 %v1472_v0  ;;  %p1445_p9 = por %p1444_p8, %p1443_p7 }
  0x3c   :  { %1180 = vmatpush3.msra.mxu0 %v82_v7  ;;  %1191 = vmatpush3.msra.mxu1 %v1551_v9 }
  0x3d   :  { %1182 = vmatmul.mubr.msk.f32.vlgmr.msra.gmra.mxu0 %vm93_vm1, %v81_v8  ;;  %1193 = vmatmul.mubr.f32.vlgmr.msra.gmra.mxu1 %v1472_v0  ;;  %p1446_p10 = pnand %p1445_p9, %p1439_p6 }
  0x3e   :  { %1195 = vmatprep.subr.mxu0 %v1472_v0  ;;  %1203 = vmatprep.mubr.msk.f32.mxu0 %vm1473_vm0, %v1472_v0 }
  0x3f   :  { %1196 = vmatpush3.msra.mxu0 %v1539_v3  ;;  %1206 = vmatprep.subr.mxu1 %v1472_v0 }
  0x40   :  { %1197 = vmatprep.subr.mxu0 %v1472_v0  ;;  %1207 = vmatpush3.msra.mxu1 %v1539_v3 }
  0x41   :  { %1198 = vmatpush3.msra.mxu0 %v1543_v5  ;;  %1208 = vmatprep.subr.mxu1 %v1472_v0 }
  0x42   :  { %1199 = vmatprep.subr.mxu0 %v1472_v0  ;;  %1209 = vmatpush3.msra.mxu1 %v1543_v5 }
  0x43   :  { %1200 = vmatpush3.msra.mxu0 %v1546_v6  ;;  %1210 = vmatprep.subr.mxu1 %v1472_v0 }
  0x44   :  { %1201 = vmatprep.subr.mxu0 %v1472_v0  ;;  %1211 = vmatpush3.msra.mxu1 %v1546_v6 }
  0x45   :  { %1202 = vmatpush3.msra.mxu0 %v1551_v9  ;;  %1212 = vmatprep.subr.mxu1 %v1472_v0 }
  0x46   :  { %1214 = vmatprep.mubr.msk.f32.mxu1 %vm1473_vm0, %v1472_v0  ;;  %1213 = vmatpush3.msra.mxu1 %v1551_v9 }
  0x47   :  { %1217 = vmatprep.subr.mxu0 %v1472_v0  ;;  %1228 = vmatprep.subr.mxu1 %v1472_v0 }
  0xfd   :  { %v163_v11 = vpop.f32.mrf.mxu0  ;;  %v242_v13 = vpop.f32.mrf.mxu1 }
  0xfe   :  { %v164_v12 = vadd.f32 %v1104_v10, %v163_v11 }
  0xff   :  { %v1183_v14 = vpop.f32.mrf.mxu0  ;;  %v1194_v15 = vpop.f32.mrf.mxu1 }
 0x100   :  { %167 = vst [vmem:[#allocation2] sm:$0xff] %v164_v12 }
 0x107   :  { %v172_v16 = vld [vmem:[#allocation2] sm:$0x1]  ;;  %v277_v32 = vld [vmem:[#allocation2 + $0x1] sm:$0x1]  ;;  %v380_v50 = vld [vmem:[#allocation2 + $0x2] sm:$0x1] }
 0x108   :  { %v246_v17 = vadd.f32 %v242_v13, %v172_v16  ;;  %v483_v8 = vld [vmem:[#allocation2 + $0x3] sm:$0x1] }
 0x10a   :  { %1294 = vtanh.f32 %v246_v17  ;;  %v1106_v19 = vmul.f32 -1.442695, %v246_v17 }
 0x10c   :  { %1296 = vpow2.f32 %v1106_v19 }
 0x117   :  { %v1295_v18 = vpop.eup %1294 }
 0x118   :  { %256 = vrot.lane.b32.xlu0 %v1295_v18, %s1474_s17 }
 0x119   :  { %v1297_v20 = vpop.eup %1296 }
 0x11a   :  { %v250_v21 = vadd.f32 1.0, %v1297_v20 }
 0x11c   :  { %1298 = vrcp.f32 %v250_v21 }
 0x129   :  { %v1299_v22 = vpop.eup %1298 }
 0x12a   :  { %v254_v25 = vmul.f32 0.0, %v1299_v22 }
 0x18a   :  { %v257_v23 = vpop.permute.xlu0 %256 }
 0x18b   :  { %v259_v24 = vmul.f32 %v1299_v22, %v257_v23 }
 0x18d   :  { %261 = vrot.lane.b32.xlu0 %v259_v24, %s1474_s17 }
 0x1ff   :  { %v262_v26 = vpop.permute.xlu0 %261 }
 0x200   :  { %v264_v27 = vadd.f32 %v262_v26, %v254_v25 }
 0x202   :  { %1300 = vtanh.f32 %v264_v27 }
 0x20f   :  { %v1301_v28 = vpop.eup %1300 }
 0x210   :  { %267 = vrot.lane.b32.xlu1 %v1301_v28, %s1474_s17 }
 0x282   :  { %v268_v29 = vpop.permute.xlu1 %267 }
 0x283   :  { %v270_v30 = vmul.f32 %v1299_v22, %v268_v29 }
 0x285   :  { %272 = vrot.lane.b32.xlu1 %v270_v30, %s1475_s3 }
 0x2f7   :  { %v273_v31 = vpop.permute.xlu1 %272 }
 0x2f8   :  { %276 = vst.msk [vmem:[#allocation3] sm:$0x1] %vm275_vm2, %v273_v31  ;;  %1204 = vmatmul.mubr.msk.f32.vlgmr.msra.gmra.mxu0 %vm93_vm1, %v273_v31 }
 0x2f9   :  { %1218 = vmatpush3.msra.mxu0 %v1539_v3  ;;  %1225 = vmatprep.mubr.msk.f32.mxu0 %vm1473_vm0, %v1472_v0 }
 0x2fa   :  { %1219 = vmatprep.subr.mxu0 %v1472_v0 }
 0x2fb   :  { %1220 = vmatpush3.msra.mxu0 %v1543_v5 }
 0x2fc   :  { %1221 = vmatprep.subr.mxu0 %v1472_v0 }
 0x2fd   :  { %1222 = vmatpush3.msra.mxu0 %v1546_v6 }
 0x2fe   :  { %1223 = vmatprep.subr.mxu0 %v1472_v0 }
 0x2ff   :  { %1224 = vmatpush3.msra.mxu0 %v1551_v9 }
 0x300   :  { %1239 = vmatprep.subr.mxu0 %v1472_v0 }
 0x3b8   :  { %v346_v33 = vpop.f32.mrf.mxu0 }
 0x3b9   :  { %v350_v34 = vadd.f32 %v346_v33, %v277_v32 }
 0x3ba   :  { %v1205_v35 = vpop.f32.mrf.mxu0 }
 0x3bb   :  { %1302 = vtanh.f32 %v350_v34  ;;  %v1108_v37 = vmul.f32 -1.442695, %v350_v34 }
 0x3bd   :  { %1304 = vpow2.f32 %v1108_v37 }
 0x3c8   :  { %v1303_v36 = vpop.eup %1302 }
 0x3c9   :  { %360 = vrot.lane.b32.xlu0 %v1303_v36, %s1474_s17 }
 0x3ca   :  { %v1305_v38 = vpop.eup %1304 }
 0x3cb   :  { %v354_v39 = vadd.f32 1.0, %v1305_v38 }
 0x3cd   :  { %1306 = vrcp.f32 %v354_v39 }
 0x3da   :  { %v1307_v40 = vpop.eup %1306 }
 0x3db   :  { %v358_v43 = vmul.f32 %v1307_v40, %v264_v27  ;;  %v586_v27 = vld [vmem:[#allocation2 + $0x4] sm:$0x1] }
 0x43b   :  { %v361_v41 = vpop.permute.xlu0 %360 }
 0x43c   :  { %v363_v42 = vmul.f32 %v1307_v40, %v361_v41 }
 0x43e   :  { %365 = vrot.lane.b32.xlu1 %v363_v42, %s1474_s17 }
 0x4b0   :  { %v366_v44 = vpop.permute.xlu1 %365 }
 0x4b1   :  { %v368_v45 = vadd.f32 %v366_v44, %v358_v43 }
 0x4b3   :  { %1308 = vtanh.f32 %v368_v45 }
 0x4c0   :  { %v1309_v46 = vpop.eup %1308 }
 0x4c1   :  { %371 = vrot.lane.b32.xlu0 %v1309_v46, %s1474_s17 }
 0x533   :  { %v372_v47 = vpop.permute.xlu0 %371 }
 0x534   :  { %v374_v48 = vmul.f32 %v1307_v40, %v372_v47 }
 0x536   :  { %376 = vrot.lane.b32.xlu1 %v374_v48, %s1475_s3 }
 0x5a8   :  { %v377_v49 = vpop.permute.xlu1 %376 }
 0x5a9   :  { %379 = vst.msk [vmem:[#allocation3 + $0x1] sm:$0x1] %vm275_vm2, %v377_v49  ;;  %1215 = vmatmul.mubr.msk.f32.vlgmr.msra.gmra.mxu1 %vm93_vm1, %v377_v49 }
 0x5aa   :  { %1229 = vmatpush3.msra.mxu1 %v1539_v3  ;;  %1236 = vmatprep.mubr.msk.f32.mxu1 %vm1473_vm0, %v1472_v0 }
 0x5ab   :  { %1230 = vmatprep.subr.mxu1 %v1472_v0 }
 0x5ac   :  { %1231 = vmatpush3.msra.mxu1 %v1543_v5 }
 0x5ad   :  { %1232 = vmatprep.subr.mxu1 %v1472_v0 }
 0x5ae   :  { %1233 = vmatpush3.msra.mxu1 %v1546_v6 }
 0x5af   :  { %1234 = vmatprep.subr.mxu1 %v1472_v0 }
 0x5b0   :  { %1235 = vmatpush3.msra.mxu1 %v1551_v9 }
 0x5b1   :  { %1250 = vmatprep.subr.mxu1 %v1472_v0 }
 0x669   :  { %v449_v51 = vpop.f32.mrf.mxu1 }
 0x66a   :  { %v453_v52 = vadd.f32 %v449_v51, %v380_v50 }
 0x66b   :  { %v1216_v53 = vpop.f32.mrf.mxu1 }
 0x66c   :  { %1310 = vtanh.f32 %v453_v52  ;;  %v1110_v55 = vmul.f32 -1.442695, %v453_v52 }
 0x66e   :  { %1312 = vpow2.f32 %v1110_v55 }
 0x679   :  { %v1311_v54 = vpop.eup %1310 }
 0x67a   :  { %463 = vrot.lane.b32.xlu0 %v1311_v54, %s1474_s17 }
 0x67b   :  { %v1313_v56 = vpop.eup %1312 }
 0x67c   :  { %v457_v57 = vadd.f32 1.0, %v1313_v56 }
 0x67e   :  { %1314 = vrcp.f32 %v457_v57 }
 0x68b   :  { %v1315_v58 = vpop.eup %1314 }
 0x68c   :  { %v461_v61 = vmul.f32 %v1315_v58, %v368_v45  ;;  %v689_v45 = vld [vmem:[#allocation2 + $0x5] sm:$0x1] }
 0x6ec   :  { %v464_v59 = vpop.permute.xlu0 %463 }
 0x6ed   :  { %v466_v60 = vmul.f32 %v1315_v58, %v464_v59  ;;  %v792_v59 = vld [vmem:[#allocation2 + $0x6] sm:$0x1] }
 0x6ef   :  { %468 = vrot.lane.b32.xlu1 %v466_v60, %s1474_s17 }
 0x761   :  { %v469_v62 = vpop.permute.xlu1 %468 }
 0x762   :  { %v471_v63 = vadd.f32 %v469_v62, %v461_v61 }
 0x764   :  { %1316 = vtanh.f32 %v471_v63 }
 0x771   :  { %v1317_v1 = vpop.eup %1316 }
 0x772   :  { %474 = vrot.lane.b32.xlu0 %v1317_v1, %s1474_s17 }
 0x7e4   :  { %v475_v2 = vpop.permute.xlu0 %474 }
 0x7e5   :  { %v477_v4 = vmul.f32 %v1315_v58, %v475_v2 }
 0x7e7   :  { %479 = vrot.lane.b32.xlu1 %v477_v4, %s1475_s3 }
 0x859   :  { %v480_v7 = vpop.permute.xlu1 %479 }
 0x85a   :  { %482 = vst.msk [vmem:[#allocation3 + $0x2] sm:$0x1] %vm275_vm2, %v480_v7  ;;  %1226 = vmatmul.mubr.msk.f32.vlgmr.msra.gmra.mxu0 %vm93_vm1, %v480_v7 }
 0x85b   :  { %1240 = vmatpush3.msra.mxu0 %v1539_v3  ;;  %1247 = vmatprep.mubr.msk.f32.mxu0 %vm1473_vm0, %v1472_v0 }
 0x85c   :  { %1241 = vmatprep.subr.mxu0 %v1472_v0 }
 0x85d   :  { %1242 = vmatpush3.msra.mxu0 %v1543_v5 }
 0x85e   :  { %1243 = vmatprep.subr.mxu0 %v1472_v0 }
 0x85f   :  { %1244 = vmatpush3.msra.mxu0 %v1546_v6 }
 0x860   :  { %1245 = vmatprep.subr.mxu0 %v1472_v0 }
 0x861   :  { %1246 = vmatpush3.msra.mxu0 %v1551_v9 }
 0x862   :  { %1261 = vmatprep.subr.mxu0 %v1472_v0 }
 0x91a   :  { %v552_v10 = vpop.f32.mrf.mxu0 }
 0x91b   :  { %v556_v11 = vadd.f32 %v552_v10, %v483_v8 }
 0x91c   :  { %v1227_v12 = vpop.f32.mrf.mxu0 }
 0x91d   :  { %1318 = vtanh.f32 %v556_v11  ;;  %v1112_v14 = vmul.f32 -1.442695, %v556_v11 }
 0x91f   :  { %1320 = vpow2.f32 %v1112_v14 }
 0x92a   :  { %v1319_v13 = vpop.eup %1318 }
 0x92b   :  { %566 = vrot.lane.b32.xlu0 %v1319_v13, %s1474_s17 }
 0x92c   :  { %v1321_v15 = vpop.eup %1320 }
 0x92d   :  { %v560_v16 = vadd.f32 1.0, %v1321_v15 }
 0x92f   :  { %1322 = vrcp.f32 %v560_v16 }
 0x93c   :  { %v1323_v17 = vpop.eup %1322 }
 0x93d   :  { %v564_v20 = vmul.f32 %v1323_v17, %v471_v63 }
 0x99d   :  { %v567_v18 = vpop.permute.xlu0 %566 }
 0x99e   :  { %v569_v19 = vmul.f32 %v1323_v17, %v567_v18  ;;  %v895_v18 = vld [vmem:[#allocation2 + $0x7] sm:$0x1] }
 0x9a0   :  { %571 = vrot.lane.b32.xlu1 %v569_v19, %s1474_s17 }
 0xa12   :  { %v572_v21 = vpop.permute.xlu1 %571 }
 0xa13   :  { %v574_v22 = vadd.f32 %v572_v21, %v564_v20 }
 0xa15   :  { %1324 = vtanh.f32 %v574_v22 }
 0xa22   :  { %v1325_v23 = vpop.eup %1324 }
 0xa23   :  { %577 = vrot.lane.b32.xlu0 %v1325_v23, %s1474_s17 }
 0xa95   :  { %v578_v24 = vpop.permute.xlu0 %577 }
 0xa96   :  { %v580_v25 = vmul.f32 %v1323_v17, %v578_v24 }
 0xa98   :  { %582 = vrot.lane.b32.xlu1 %v580_v25, %s1475_s3 }
 0xb0a   :  { %v583_v26 = vpop.permute.xlu1 %582 }
 0xb0b   :  { %585 = vst.msk [vmem:[#allocation3 + $0x3] sm:$0x1] %vm275_vm2, %v583_v26  ;;  %1237 = vmatmul.mubr.msk.f32.vlgmr.msra.gmra.mxu1 %vm93_vm1, %v583_v26 }
 0xb0c   :  { %1251 = vmatpush3.msra.mxu1 %v1539_v3  ;;  %1258 = vmatprep.mubr.msk.f32.mxu1 %vm1473_vm0, %v1472_v0 }
 0xb0d   :  { %1252 = vmatprep.subr.mxu1 %v1472_v0 }
 0xb0e   :  { %1253 = vmatpush3.msra.mxu1 %v1543_v5 }
 0xb0f   :  { %1254 = vmatprep.subr.mxu1 %v1472_v0 }
 0xb10   :  { %1255 = vmatpush3.msra.mxu1 %v1546_v6 }
 0xb11   :  { %1256 = vmatprep.subr.mxu1 %v1472_v0 }
 0xb12   :  { %1257 = vmatpush3.msra.mxu1 %v1551_v9 }
 0xb13   :  { %1272 = vmatprep.subr.mxu1 %v1472_v0 }
 0xbcb   :  { %v655_v28 = vpop.f32.mrf.mxu1 }
 0xbcc   :  { %v659_v29 = vadd.f32 %v655_v28, %v586_v27 }
 0xbcd   :  { %v1238_v30 = vpop.f32.mrf.mxu1 }
 0xbce   :  { %1326 = vtanh.f32 %v659_v29  ;;  %v1114_v32 = vmul.f32 -1.442695, %v659_v29 }
 0xbd0   :  { %1328 = vpow2.f32 %v1114_v32 }
 0xbdb   :  { %v1327_v31 = vpop.eup %1326 }
 0xbdc   :  { %669 = vrot.lane.b32.xlu0 %v1327_v31, %s1474_s17 }
 0xbdd   :  { %v1329_v33 = vpop.eup %1328 }
 0xbde   :  { %v663_v34 = vadd.f32 1.0, %v1329_v33  ;;  %v1004_v33 = vld [vmem:[#allocation11 + $0x18] sm:$0xff] }
 0xbe0   :  { %1330 = vrcp.f32 %v663_v34  ;;  %v1003_v34 = vld [vmem:[#allocation11 + $0x10] sm:$0xff] }
 0xbed   :  { %v1331_v35 = vpop.eup %1330 }
 0xbee   :  { %v667_v38 = vmul.f32 %v1331_v35, %v574_v22 }
 0xc4e   :  { %v670_v36 = vpop.permute.xlu0 %669 }
 0xc4f   :  { %v672_v37 = vmul.f32 %v1331_v35, %v670_v36  ;;  %v1002_v36 = vld [vmem:[#allocation11 + $0x8] sm:$0xff] }
 0xc51   :  { %674 = vrot.lane.b32.xlu1 %v672_v37, %s1474_s17 }
 0xcc3   :  { %v675_v39 = vpop.permute.xlu1 %674 }
 0xcc4   :  { %v677_v40 = vadd.f32 %v675_v39, %v667_v38  ;;  %v1001_v38 = vld [vmem:[#allocation11] sm:$0xff] }
 0xcc6   :  { %1332 = vtanh.f32 %v677_v40 }
 0xcd3   :  { %v1333_v41 = vpop.eup %1332 }
 0xcd4   :  { %680 = vrot.lane.b32.xlu0 %v1333_v41, %s1474_s17 }
 0xd46   :  { %v681_v42 = vpop.permute.xlu0 %680 }
 0xd47   :  { %v683_v43 = vmul.f32 %v1331_v35, %v681_v42  ;;  %v1121_v42 = vld [vmem:[%s1698_s5] ss:$0 sm:$0xff] }
 0xd49   :  { %685 = vrot.lane.b32.xlu1 %v683_v43, %s1475_s3 }
 0xdbb   :  { %v686_v44 = vpop.permute.xlu1 %685 }
 0xdbc   :  { %688 = vst.msk [vmem:[#allocation3 + $0x4] sm:$0x1] %vm275_vm2, %v686_v44  ;;  %1248 = vmatmul.mubr.msk.f32.vlgmr.msra.gmra.mxu0 %vm93_vm1, %v686_v44 }
 0xdbd   :  { %1262 = vmatpush3.msra.mxu0 %v1539_v3  ;;  %1269 = vmatprep.mubr.msk.f32.mxu0 %vm1473_vm0, %v1472_v0 }
 0xdbe   :  { %1263 = vmatprep.subr.mxu0 %v1472_v0 }
 0xdbf   :  { %1264 = vmatpush3.msra.mxu0 %v1543_v5 }
 0xdc0   :  { %1265 = vmatprep.subr.mxu0 %v1472_v0 }
 0xdc1   :  { %1266 = vmatpush3.msra.mxu0 %v1546_v6 }
 0xdc2   :  { %1267 = vmatprep.subr.mxu0 %v1472_v0 }
 0xdc3   :  { %1268 = vmatpush3.msra.mxu0 %v1551_v9 }
 0xe7c   :  { %v758_v46 = vpop.f32.mrf.mxu0 }
 0xe7d   :  { %v762_v47 = vadd.f32 %v758_v46, %v689_v45 }
 0xe7e   :  { %v1249_v48 = vpop.f32.mrf.mxu0 }
 0xe7f   :  { %1334 = vtanh.f32 %v762_v47  ;;  %v1116_v49 = vmul.f32 -1.442695, %v762_v47 }
 0xe81   :  { %1336 = vpow2.f32 %v1116_v49 }
 0xe8c   :  { %v1335_v3 = vpop.eup %1334 }
 0xe8d   :  { %772 = vrot.lane.b32.xlu0 %v1335_v3, %s1474_s17 }
 0xe8e   :  { %v1337_v50 = vpop.eup %1336 }
 0xe8f   :  { %v766_v5 = vadd.f32 1.0, %v1337_v50 }
 0xe91   :  { %1338 = vrcp.f32 %v766_v5 }
 0xe9e   :  { %v1339_v51 = vpop.eup %1338 }
 0xe9f   :  { %v770_v53 = vmul.f32 %v1339_v51, %v677_v40 }
 0xeff   :  { %v773_v52 = vpop.permute.xlu0 %772 }
 0xf00   :  { %v775_v6 = vmul.f32 %v1339_v51, %v773_v52 }
 0xf02   :  { %777 = vrot.lane.b32.xlu1 %v775_v6, %s1474_s17 }
 0xf74   :  { %v778_v9 = vpop.permute.xlu1 %777 }
 0xf75   :  { %v780_v54 = vadd.f32 %v778_v9, %v770_v53 }
 0xf77   :  { %1340 = vtanh.f32 %v780_v54 }
 0xf84   :  { %v1341_v55 = vpop.eup %1340 }
 0xf85   :  { %783 = vrot.lane.b32.xlu0 %v1341_v55, %s1474_s17 }
 0xff7   :  { %v784_v56 = vpop.permute.xlu0 %783 }
 0xff8   :  { %v786_v57 = vmul.f32 %v1339_v51, %v784_v56 }
 0xffa   :  { %788 = vrot.lane.b32.xlu1 %v786_v57, %s1475_s3 }
0x106c   :  { %v789_v58 = vpop.permute.xlu1 %788 }
0x106d   :  { %791 = vst.msk [vmem:[#allocation3 + $0x5] sm:$0x1] %vm275_vm2, %v789_v58  ;;  %1259 = vmatmul.mubr.msk.f32.vlgmr.msra.gmra.mxu1 %vm93_vm1, %v789_v58 }
0x106e   :  { %1280 = vmatprep.mubr.msk.f32.mxu1 %vm1473_vm0, %v1472_v0  ;;  %1273 = vmatpush3.msra.mxu1 %v1004_v33 }
0x106f   :  { %1274 = vmatprep.subr.mxu1 %v1472_v0 }
0x1070   :  { %1275 = vmatpush3.msra.mxu1 %v1003_v34 }
0x1071   :  { %1276 = vmatprep.subr.mxu1 %v1472_v0 }
0x1072   :  { %1277 = vmatpush3.msra.mxu1 %v1002_v36 }
0x1073   :  { %1278 = vmatprep.subr.mxu1 %v1472_v0 }
0x1074   :  { %1279 = vmatpush3.msra.mxu1 %v1001_v38 }
0x112d   :  { %v861_v60 = vpop.f32.mrf.mxu1 }
0x112e   :  { %v865_v61 = vadd.f32 %v861_v60, %v792_v59 }
0x112f   :  { %v1260_v62 = vpop.f32.mrf.mxu1 }
0x1130   :  { %1342 = vtanh.f32 %v865_v61  ;;  %v1118_v1 = vmul.f32 -1.442695, %v865_v61 }
0x1132   :  { %1344 = vpow2.f32 %v1118_v1 }
0x113d   :  { %v1343_v63 = vpop.eup %1342 }
0x113e   :  { %875 = vrot.lane.b32.xlu0 %v1343_v63, %s1474_s17 }
0x113f   :  { %v1345_v2 = vpop.eup %1344 }
0x1140   :  { %v869_v4 = vadd.f32 1.0, %v1345_v2 }
0x1142   :  { %1346 = vrcp.f32 %v869_v4 }
0x114f   :  { %v1347_v7 = vpop.eup %1346 }
0x1150   :  { %v873_v11 = vmul.f32 %v1347_v7, %v780_v54 }
0x11b0   :  { %v876_v8 = vpop.permute.xlu0 %875 }
0x11b1   :  { %v878_v10 = vmul.f32 %v1347_v7, %v876_v8 }
0x11b3   :  { %880 = vrot.lane.b32.xlu1 %v878_v10, %s1474_s17 }
0x1225   :  { %v881_v12 = vpop.permute.xlu1 %880 }
0x1226   :  { %v883_v13 = vadd.f32 %v881_v12, %v873_v11 }
0x1228   :  { %1348 = vtanh.f32 %v883_v13 }
0x1235   :  { %v1349_v14 = vpop.eup %1348 }
0x1236   :  { %886 = vrot.lane.b32.xlu0 %v1349_v14, %s1474_s17 }
0x12a8   :  { %v887_v15 = vpop.permute.xlu0 %886 }
0x12a9   :  { %v889_v16 = vmul.f32 %v1347_v7, %v887_v15 }
0x12ab   :  { %891 = vrot.lane.b32.xlu1 %v889_v16, %s1475_s3 }
0x131d   :  { %v892_v17 = vpop.permute.xlu1 %891 }
0x131e   :  { %894 = vst.msk [vmem:[#allocation3 + $0x6] sm:$0x1] %vm275_vm2, %v892_v17  ;;  %1270 = vmatmul.mubr.msk.f32.vlgmr.msra.gmra.mxu0 %vm93_vm1, %v892_v17 }
0x13de   :  { %v964_v19 = vpop.f32.mrf.mxu0 }
0x13df   :  { %v968_v20 = vadd.f32 %v964_v19, %v895_v18 }
0x13e0   :  { %v1271_v21 = vpop.f32.mrf.mxu0 }
0x13e1   :  { %1350 = vtanh.f32 %v968_v20  ;;  %v1120_v23 = vmul.f32 -1.442695, %v968_v20 }
0x13e3   :  { %1352 = vpow2.f32 %v1120_v23 }
0x13ee   :  { %v1351_v22 = vpop.eup %1350 }
0x13ef   :  { %978 = vrot.lane.b32.xlu0 %v1351_v22, %s1474_s17 }
0x13f0   :  { %v1353_v24 = vpop.eup %1352 }
0x13f1   :  { %v972_v25 = vadd.f32 1.0, %v1353_v24 }
0x13f3   :  { %1354 = vrcp.f32 %v972_v25 }
0x1400   :  { %v1355_v26 = vpop.eup %1354 }
0x1401   :  { %v976_v29 = vmul.f32 %v1355_v26, %v883_v13 }
0x1461   :  { %v979_v27 = vpop.permute.xlu0 %978 }
0x1462   :  { %v981_v28 = vmul.f32 %v1355_v26, %v979_v27 }
0x1464   :  { %983 = vrot.lane.b32.xlu1 %v981_v28, %s1474_s17 }
0x14d6   :  { %v984_v30 = vpop.permute.xlu1 %983 }
0x14d7   :  { %v986_v31 = vadd.f32 %v984_v30, %v976_v29 }
0x14d9   :  { %1356 = vtanh.f32 %v986_v31 }
0x14e6   :  { %v1357_v32 = vpop.eup %1356 }
0x14e7   :  { %989 = vrot.lane.b32.xlu0 %v1357_v32, %s1474_s17 }
0x1559   :  { %v990_v35 = vpop.permute.xlu0 %989 }
0x155a   :  { %v992_v37 = vmul.f32 %v1355_v26, %v990_v35 }
0x155c   :  { %994 = vrot.lane.b32.xlu1 %v992_v37, %s1475_s3 }
0x15ce   :  { %v995_v39 = vpop.permute.xlu1 %994 }
0x15cf   :  { %997 = vst.msk [vmem:[#allocation3 + $0x7] sm:$0x1] %vm275_vm2, %v995_v39 }
0x15d6   :  { %v998_v40 = vld [vmem:[#allocation3] sm:$0xff] }
0x15d7   :  { %999 = vst.msk [vmem:[#allocation4] sm:$0xff] %vm93_vm1, %v998_v40 }
0x15de   :  { %v1000_v41 = vld [vmem:[#allocation4] sm:$0xff] }
0x15df   :  { %1281 = vmatmul.mubr.msk.f32.vlgmr.msra.gmra.mxu1 %vm93_vm1, %v1000_v41 }
0x169f   :  { %v1082_v43 = vpop.f32.mrf.mxu1 }
0x16a0   :  { %v1083_v44 = vadd.f32 %v1121_v42, %v1082_v43 }
0x16a1   :  { %v1282_v0 = vpop.f32.mrf.mxu1 }
0x16a2   :  { %1086 = vst [vmem:[#allocation13] sm:$0xff] %v1083_v44 }
0x16a3   :  { %1449 = shalt.err (!%p1446_p10)
}
0x16a4   :  { %1096 = dma.vmem_to_hbm [thread:$0]  %s1094_s21, 128, %s1699_s6, [#allocation7]  }
0x16a5   :  { %1464 = dma.done.wait [#allocation7], 128  }
0x16a6   :  { %1465 = vsyncadd [#allocation7], 4294967168 }
0x16a7   :  { %1100 = vsyncpa [#allocation6], 1 }
0x16a8   :  { %1101 = vsyncpa [#allocation9], 1 }
0x16a9   :  { %1102 = vsyncpa [#allocation12], 1 }
0x16aa   :  { %1103 = vsyncpa [#allocation7], 1 }

</bundles_post_ra>
